<compile_context>
chip_gen: v7x
topology: tpu7x:2x2x1
jax: 0.10.0
libtpu: 0.0.40
codegen_flags: <defaults>
</compile_context>

<pallas_src>
import functools

import numpy as np
import jax
import jax.numpy as jnp
from jax import lax
from jax.experimental import pallas as pl
from jax.experimental.pallas import tpu as pltpu


# ---------------------------------------------------------------------------
# Pallas kernel: in-kernel im2col + parity-packed matmul + fused leaky where
# ---------------------------------------------------------------------------
def convt_leaky_kernel(x_ref, w_ref, o_ref, p_ref, *, im_w):
    # x_ref: (8, X_len)      flattened input: rows 0..C_in-1 = channels,
    #                        row C_in = ones (bias path), rest = zeros
    # w_ref: (4*C_out, 72)   parity-packed ConvTranspose2d weights (+bias column)
    # o_ref: (4*C_out, M_pad) lane-dense output (M_pad multiple of 128)
    # p_ref: (72, M_pad)     VMEM scratch holding the im2col matrix
    m_pad = p_ref.shape[1]
    n_taps = p_ref.shape[0] // 8            # 9 taps of a 3x3 stride-1 window
    for t in range(n_taps):                 # static, fully unrolled
        i, j = t // 3, t % 3
        off = i * im_w + j                  # static lane shift of the flat input
        # aligned full (8, M_pad) store; source is a statically shifted lane slice
        p_ref[t * 8:(t + 1) * 8, :] = x_ref[:, off:off + m_pad]
    acc = jnp.dot(w_ref[...], p_ref[...], preferred_element_type=jnp.float32)
    o_ref[...] = jnp.where(acc > 0.0, acc, acc * -3.83)


# ---------------------------------------------------------------------------
# One-time weight/bias repack (static weights -> not in the hot path)
# ---------------------------------------------------------------------------
def prepare_convt_params(weight, bias):
    """Fold ConvTranspose2d(k=4, stride=2, padding=3) weights + bias into the
    parity-packed matmul form.

    Y[co, 2a+r, 2b+q] = bias[co] +
        sum_{ci, i in {r,r+1}, j in {q,q+1}} X[ci, a+i, b+j] * W[ci, co, 3+r-2i, 3+q-2j]

    K layout (72 columns): tap t = i*3+j owns columns [t*8, t*8+8); column
    t*8+ci is channel ci; column 0*8+C_in (the 'ones' row of the flattened
    input) carries the bias.  Remaining columns are zero.
    """
    w = np.asarray(weight, dtype=np.float32)          # (C_in, C_out, 4, 4)
    b = np.asarray(bias, dtype=np.float32)            # (C_out,)
    c_in, c_out, kh, kw = w.shape
    assert (kh, kw) == (4, 4), "repack is specialized to kernel_size=4, stride=2, padding=3"
    assert c_in < 8, "channel packing assumes C_in < 8"

    k_pad = 9 * 8
    wc = np.zeros((c_out, 2, 2, k_pad), np.float32)
    for r in range(2):
        for q in range(2):
            for i in (r, r + 1):
                for j in (q, q + 1):
                    t = i * 3 + j
                    wc[:, r, q, t * 8:t * 8 + c_in] = w[:, :, 3 + r - 2 * i, 3 + q - 2 * j].T
            wc[:, r, q, c_in] = b                     # bias -> 'ones' row of tap 0
    wc = wc.reshape(c_out * 4, k_pad)                 # rows: co*4 + r*2 + q
    return jnp.asarray(wc)


# ---------------------------------------------------------------------------
# Forward: thin JAX glue + one pallas_call
# ---------------------------------------------------------------------------
def conv_transpose2d_leaky(x, wc):
    """x: (N, C_in, H, W) NCHW float32; wc from prepare_convt_params."""
    n, c_in, h, w = x.shape
    rows = wc.shape[0]                     # 4 * C_out
    c_out = rows // 4
    k_pad = wc.shape[1]                    # 72

    ho, wo = 2 * h - 4, 2 * w - 4          # (H-1)*2 - 2*3 + 4
    a_dim, b_dim = h - 2, w - 2            # per-parity output grid
    l = h * w                              # per-batch flat spatial length
    m = n * l                              # raw column count (b >= W-2 cols are junk)
    m_pad = ((m + 127) // 128) * 128       # lane-dense output columns
    max_off = 2 * w + 2                    # largest im2col lane shift
    x_len = ((m_pad + max_off + 127) // 128) * 128

    # Flatten input to (8, X_len): channels, then a 'ones' row (bias path), then zeros.
    # (This ~4 KiB flatten/pad is the only glue on the input side — no im2col in HBM.)
    x_flat = x.astype(jnp.float32).transpose(1, 0, 2, 3).reshape(c_in, m)
    x_flat = jnp.pad(x_flat, ((0, 0), (0, x_len - m)))
    ones_row = jnp.ones((1, x_len), jnp.float32)
    zero_rows = jnp.zeros((8 - c_in - 1, x_len), jnp.float32)
    x_flat = jnp.concatenate([x_flat, ones_row, zero_rows], axis=0)   # (8, X_len)

    kernel = functools.partial(convt_leaky_kernel, im_w=w)

    out = pl.pallas_call(
        kernel,
        out_shape=jax.ShapeDtypeStruct((rows, m_pad), jnp.float32),
        in_specs=[
            pl.BlockSpec((8, x_len), lambda: (0, 0)),
            pl.BlockSpec((rows, k_pad), lambda: (0, 0)),
        ],
        out_specs=pl.BlockSpec((rows, m_pad), lambda: (0, 0)),
        scratch_shapes=[pltpu.VMEM((k_pad, m_pad), jnp.float32)],
        cost_estimate=pl.CostEstimate(
            flops=2 * rows * k_pad * m_pad,
            transcendentals=0,
            bytes_accessed=4 * (8 * x_len + rows * k_pad + rows * m_pad),
        ),
    )(x_flat, wc)                                              # (4*C_out, M_pad)

    # Pixel-shuffle the parity rows back into the NCHW raster (small fused XLA op).
    y = out[:, :m].reshape(c_out, 2, 2, n, h, w)[:, :, :, :, :a_dim, :b_dim]
    y = y.transpose(3, 0, 4, 1, 5, 2).reshape(n, c_out, ho, wo)
    return y


if __name__ == "__main__":
    key = jax.random.PRNGKey(0)
    kx, kw_, kb = jax.random.split(key, 3)

    # module shapes: input (1, 3, 17, 15), weight (3, 64, 4, 4), bias (64,)
    x = jax.random.normal(kx, (1, 3, 17, 15), dtype=jnp.float32)
    weight = jax.random.normal(kw_, (3, 64, 4, 4), dtype=jnp.float32) * 0.1
    bias = jax.random.normal(kb, (64,), dtype=jnp.float32) * 0.1

    wc = prepare_convt_params(weight, bias)        # once, outside the hot path
    fwd = jax.jit(conv_transpose2d_leaky)

    y = jax.block_until_ready(fwd(x, wc))

    # reference: ConvTranspose2d == lhs-dilated conv with flipped kernel, then leaky where
    w_flip = weight[:, :, ::-1, ::-1].transpose(1, 0, 2, 3)   # (C_out, C_in, kH, kW)
    ref = lax.conv_general_dilated(
        x, w_flip,
        window_strides=(1, 1),
        padding=[(4 - 1 - 3, 4 - 1 - 3)] * 2,
        lhs_dilation=(2, 2),
        dimension_numbers=("NCHW", "OIHW", "NCHW"),
    ) + bias.reshape(1, -1, 1, 1)
    ref = jnp.where(ref > 0, ref, ref * -3.83)

    assert y.shape == (1, 64, 30, 26), y.shape
    assert jnp.allclose(y, ref, atol=1e-4, rtol=1e-4), float(jnp.max(jnp.abs(y - ref)))

    print("KERNEL_OK")
</pallas_src>

<mosaic_0001>
module attributes {stable_mosaic.version = 11 : i64} {
  func.func @convt_leaky_kernel(%arg0: memref<8x384xf32, #tpu.memory_space<vmem>>, %arg1: memref<256x72xf32, #tpu.memory_space<vmem>>, %arg2: memref<256x256xf32, #tpu.memory_space<vmem>>, %arg3: memref<72x256xf32, #tpu.memory_space<vmem>>) attributes {dimension_semantics = [], scalar_prefetch = 0 : i64, scratch_operands = 1 : i64, tpu.core_type = #tpu.core_type<tc>} {
    %c0 = arith.constant 0 : index
    %c0_0 = arith.constant 0 : index
    %0 = vector.load %arg0[%c0, %c0_0] : memref<8x384xf32, #tpu.memory_space<vmem>>, vector<8x256xf32>
    %c0_1 = arith.constant 0 : index
    %c0_2 = arith.constant 0 : index
    %1 = vector.load %arg3[%c0_1, %c0_2] : memref<72x256xf32, #tpu.memory_space<vmem>>, vector<8x256xf32>
    tpu.vector_store %arg3[%c0_1, %c0_2], %0 {strides = array<i32>} : memref<72x256xf32, #tpu.memory_space<vmem>>, vector<8x256xf32>,
    %c0_3 = arith.constant 0 : index
    %c1 = arith.constant 1 : index
    %2 = vector.load %arg0[%c0_3, %c1] : memref<8x384xf32, #tpu.memory_space<vmem>>, vector<8x256xf32>
    %c8 = arith.constant 8 : index
    %c0_4 = arith.constant 0 : index
    %3 = vector.load %arg3[%c8, %c0_4] : memref<72x256xf32, #tpu.memory_space<vmem>>, vector<8x256xf32>
    tpu.vector_store %arg3[%c8, %c0_4], %2 {strides = array<i32>} : memref<72x256xf32, #tpu.memory_space<vmem>>, vector<8x256xf32>,
    %c0_5 = arith.constant 0 : index
    %c2 = arith.constant 2 : index
    %4 = vector.load %arg0[%c0_5, %c2] : memref<8x384xf32, #tpu.memory_space<vmem>>, vector<8x256xf32>
    %c16 = arith.constant 16 : index
    %c0_6 = arith.constant 0 : index
    %5 = vector.load %arg3[%c16, %c0_6] : memref<72x256xf32, #tpu.memory_space<vmem>>, vector<8x256xf32>
    tpu.vector_store %arg3[%c16, %c0_6], %4 {strides = array<i32>} : memref<72x256xf32, #tpu.memory_space<vmem>>, vector<8x256xf32>,
    %c0_7 = arith.constant 0 : index
    %c15 = arith.constant 15 : index
    %6 = vector.load %arg0[%c0_7, %c15] : memref<8x384xf32, #tpu.memory_space<vmem>>, vector<8x256xf32>
    %c24 = arith.constant 24 : index
    %c0_8 = arith.constant 0 : index
    %7 = vector.load %arg3[%c24, %c0_8] : memref<72x256xf32, #tpu.memory_space<vmem>>, vector<8x256xf32>
    tpu.vector_store %arg3[%c24, %c0_8], %6 {strides = array<i32>} : memref<72x256xf32, #tpu.memory_space<vmem>>, vector<8x256xf32>,
    %c0_9 = arith.constant 0 : index
    %c16_10 = arith.constant 16 : index
    %8 = vector.load %arg0[%c0_9, %c16_10] : memref<8x384xf32, #tpu.memory_space<vmem>>, vector<8x256xf32>
    %c32 = arith.constant 32 : index
    %c0_11 = arith.constant 0 : index
    %9 = vector.load %arg3[%c32, %c0_11] : memref<72x256xf32, #tpu.memory_space<vmem>>, vector<8x256xf32>
    tpu.vector_store %arg3[%c32, %c0_11], %8 {strides = array<i32>} : memref<72x256xf32, #tpu.memory_space<vmem>>, vector<8x256xf32>,
    %c0_12 = arith.constant 0 : index
    %c17 = arith.constant 17 : index
    %10 = vector.load %arg0[%c0_12, %c17] : memref<8x384xf32, #tpu.memory_space<vmem>>, vector<8x256xf32>
    %c40 = arith.constant 40 : index
    %c0_13 = arith.constant 0 : index
    %11 = vector.load %arg3[%c40, %c0_13] : memref<72x256xf32, #tpu.memory_space<vmem>>, vector<8x256xf32>
    tpu.vector_store %arg3[%c40, %c0_13], %10 {strides = array<i32>} : memref<72x256xf32, #tpu.memory_space<vmem>>, vector<8x256xf32>,
    %c0_14 = arith.constant 0 : index
    %c30 = arith.constant 30 : index
    %12 = vector.load %arg0[%c0_14, %c30] : memref<8x384xf32, #tpu.memory_space<vmem>>, vector<8x256xf32>
    %c48 = arith.constant 48 : index
    %c0_15 = arith.constant 0 : index
    %13 = vector.load %arg3[%c48, %c0_15] : memref<72x256xf32, #tpu.memory_space<vmem>>, vector<8x256xf32>
    tpu.vector_store %arg3[%c48, %c0_15], %12 {strides = array<i32>} : memref<72x256xf32, #tpu.memory_space<vmem>>, vector<8x256xf32>,
    %c0_16 = arith.constant 0 : index
    %c31 = arith.constant 31 : index
    %14 = vector.load %arg0[%c0_16, %c31] : memref<8x384xf32, #tpu.memory_space<vmem>>, vector<8x256xf32>
    %c56 = arith.constant 56 : index
    %c0_17 = arith.constant 0 : index
    %15 = vector.load %arg3[%c56, %c0_17] : memref<72x256xf32, #tpu.memory_space<vmem>>, vector<8x256xf32>
    tpu.vector_store %arg3[%c56, %c0_17], %14 {strides = array<i32>} : memref<72x256xf32, #tpu.memory_space<vmem>>, vector<8x256xf32>,
    %c0_18 = arith.constant 0 : index
    %c32_19 = arith.constant 32 : index
    %16 = vector.load %arg0[%c0_18, %c32_19] : memref<8x384xf32, #tpu.memory_space<vmem>>, vector<8x256xf32>
    %c64 = arith.constant 64 : index
    %c0_20 = arith.constant 0 : index
    %17 = vector.load %arg3[%c64, %c0_20] : memref<72x256xf32, #tpu.memory_space<vmem>>, vector<8x256xf32>
    tpu.vector_store %arg3[%c64, %c0_20], %16 {strides = array<i32>} : memref<72x256xf32, #tpu.memory_space<vmem>>, vector<8x256xf32>,
    %c0_21 = arith.constant 0 : index
    %c0_22 = arith.constant 0 : index
    %18 = vector.load %arg1[%c0_21, %c0_22] : memref<256x72xf32, #tpu.memory_space<vmem>>, vector<256x72xf32>
    %c0_23 = arith.constant 0 : index
    %c0_24 = arith.constant 0 : index
    %19 = vector.load %arg3[%c0_23, %c0_24] : memref<72x256xf32, #tpu.memory_space<vmem>>, vector<72x256xf32>
    %cst = arith.constant dense<0.000000e+00> : vector<256x256xf32>
    %20 = tpu.matmul %18, %19, %cst {dimension_numbers = #tpu.dot_dimension_numbers<[1], [0], [0], [1], [0, 0, 1, 1], [], []>} : vector<256x72xf32>, vector<72x256xf32>, vector<256x256xf32> -> vector<256x256xf32>
    %cst_25 = arith.constant 0.000000e+00 : f32
    %21 = vector.broadcast %cst_25 : f32 to vector<256x256xf32>
    %22 = arith.cmpf ogt, %20, %21 : vector<256x256xf32>
    %cst_26 = arith.constant -3.830000e+00 : f32
    %23 = vector.broadcast %cst_26 : f32 to vector<256x256xf32>
    %24 = arith.mulf %20, %23 : vector<256x256xf32>
    %25 = arith.select %22, %20, %24 : vector<256x256xi1>, vector<256x256xf32>
    %c0_27 = arith.constant 0 : index
    %c0_28 = arith.constant 0 : index
    %26 = vector.load %arg2[%c0_27, %c0_28] : memref<256x256xf32, #tpu.memory_space<vmem>>, vector<256x256xf32>
    tpu.vector_store %arg2[%c0_27, %c0_28], %25 {strides = array<i32>} : memref<256x256xf32, #tpu.memory_space<vmem>>, vector<256x256xf32>,
    return
  }
}

</mosaic_0001>

<bundles_post_ra>
// kernel: conv_transpose2d_leaky.1
= control target key start
LH: loop header
LB: loop body
LE: loop exit
PB: predicated region body
PF: predicated region fallthrough
CT: control target
= control target key end

     0   :  { %s933_s13 = smov 126   ;;  %s934_s14 = smov 127   ;;  %v940_v4 = vmov 0.0   ;;  %vm27_vm0 = vcmask 1039360   ;;  %vm65_vm1 = vcmask 924672   ;;  %vm46_vm2 = vcmask 1031168   ;;  %s1318_s0 = inlined_call_operand.vmem [shape: f32[8,384], index: 0, kind: input, shape index: {}]   ;;  %s1319_s1 = inlined_call_operand.vmem [shape: f32[256,72], index: 1, kind: input, shape index: {}]   ;;  %s1320_s2 = inlined_call_operand.vmem [shape: f32[256,256], index: 2, kind: output, shape index: {}]  }
   0x1   :  { %v35_v0 = vld [vmem:[%s1318_s0 + $0x8] sm:$0xff]  ;;  %v36_v1 = vld [vmem:[%s1318_s0 + $0x10] sm:$0xff]  ;;  %v15_v3 = vld [vmem:[%s1318_s0] sm:$0xff]  ;;  %s935_s17 = smov 113   ;;  %s936_s18 = smov 111   ;;  %378 = vmatprep.mubr.f32.mxu0 %v940_v4  ;;  %474 = vmatprep.mubr.f32.mxu1 %v940_v4  ;;  %vm103_vm3 = vcmask 908288  }
   0x2   :  { %v903_v2 = vpack.i.bf16 %v36_v1, %v35_v0  ;;  %s937_s19 = smov 112   ;;  %s938_s20 = smov 97   ;;  %vm84_vm4 = vcmask 916480   ;;  %vm141_vm5 = vcmask 793600   ;;  %vm122_vm6 = vcmask 801792   ;;  %v167_v59 = vld [vmem:[%s1319_s1] sm:$0xff] }
   0x3   :  { %s939_s21 = smov 98   ;;  %s941_s0 = smov 96   ;;  %vm160_vm7 = vcmask 785408   ;;  %vm217_vm8 = vcmask 588800   ;;  %v183_v60 = vld [vmem:[%s1319_s1 + $0x80] sm:$0xff]  ;;  %v168_v62 = vld [vmem:[%s1319_s1 + $0x8] sm:$0xff] }
   0x4   :  { %904 = vrot.lane.b32.xlu1 %v903_v2, %s933_s13  ;;  %899 = vrot.lane.b32.xlu0 %v903_v2, %s934_s14  ;;  %v184_v63 = vld [vmem:[%s1319_s1 + $0x88] sm:$0xff] }
   0x8   :  { %909 = vrot.lane.b32.xlu1 %v903_v2, %s935_s17  ;;  %21 = vrot.lane.b32.xlu0 %v15_v3, %s934_s14 }
   0xc   :  { %59 = vrot.lane.b32.xlu1 %v15_v3, %s935_s17  ;;  %40 = vrot.lane.b32.xlu0 %v15_v3, %s933_s13 }
  0x10   :  { %919 = vrot.lane.b32.xlu1 %v903_v2, %s936_s18  ;;  %914 = vrot.lane.b32.xlu0 %v903_v2, %s937_s19 }
  0x14   :  { %97 = vrot.lane.b32.xlu1 %v15_v3, %s936_s18  ;;  %78 = vrot.lane.b32.xlu0 %v15_v3, %s937_s19 }
  0x18   :  { %929 = vrot.lane.b32.xlu1 %v903_v2, %s938_s20  ;;  %924 = vrot.lane.b32.xlu0 %v903_v2, %s939_s21  ;;  %v170_v2 = vld [vmem:[%s1319_s1 + $0x18] sm:$0xff] }
  0x1c   :  { %135 = vrot.lane.b32.xlu1 %v15_v3, %s938_s20  ;;  %116 = vrot.lane.b32.xlu0 %v15_v3, %s939_s21 }
  0x20   :  { %158 = vrot.lane.b32.xlu1 %v36_v1, %s941_s0  ;;  %156 = vrot.lane.b32.xlu0 %v35_v0, %s941_s0  ;;  %v185_v1 = vld [vmem:[%s1319_s1 + $0x90] sm:$0xff] }
  0x24   :  { %154 = vrot.lane.b32.xlu0 %v15_v3, %s941_s0 }
  0x76   :  { %v905_v5 = vpop.permute.xlu1 %904  ;;  %v900_v6 = vpop.permute.xlu0 %899 }
  0x77   :  { %v902_v7 = vunpack.i.h.bf16 %v900_v6  ;;  %v901_v8 = vunpack.i.l.bf16 %v900_v6  ;;  %v907_v9 = vunpack.i.h.bf16 %v905_v5  ;;  %v906_v10 = vunpack.i.l.bf16 %v905_v5  ;;  %v171_v5 = vld [vmem:[%s1319_s1 + $0x20] sm:$0xff] }
  0x78   :  { %v187_v6 = vld [vmem:[%s1319_s1 + $0xa0] sm:$0xff] }
  0x79   :  { %v29_v11 = vsel %vm27_vm0, %v901_v8, %v902_v7  ;;  %v48_v19 = vsel %vm46_vm2, %v906_v10, %v907_v9  ;;  %v172_v7 = vld [vmem:[%s1319_s1 + $0x28] sm:$0xff]  ;;  %v173_v9 = vld [vmem:[%s1319_s1 + $0x30] sm:$0xff] }
  0x7a   :  { %v910_v12 = vpop.permute.xlu1 %909  ;;  %v22_v13 = vpop.permute.xlu0 %21  ;;  %v863_v14 = vpack.c.bf16 %v29_v11, %v35_v0  ;;  %v169_v0 = vld [vmem:[%s1319_s1 + $0x10] sm:$0xff]  ;;  %v174_v11 = vld [vmem:[%s1319_s1 + $0x38] sm:$0xff] }
  0x7b   :  { %v912_v15 = vunpack.i.h.bf16 %v910_v12  ;;  %v911_v16 = vunpack.i.l.bf16 %v910_v12  ;;  %v28_v17 = vsel %vm27_vm0, %v22_v13, %v901_v8  ;;  %v188_v8 = vld [vmem:[%s1319_s1 + $0xa8] sm:$0xff]  ;;  %v190_v12 = vld [vmem:[%s1319_s1 + $0xb8] sm:$0xff]  ;;  %v175_v13 = vld [vmem:[%s1319_s1 + $0x40] sm:$0xff] }
  0x7c   :  { %864 = vmatprep.subr.bf16.mxu0 %v863_v14  ;;  %879 = vmatprep.subr.bf16.mxu1 %v863_v14  ;;  %v865_v18 = vpack.c.bf16 %v28_v17, %v15_v3  ;;  %v186_v3 = vld [vmem:[%s1319_s1 + $0x98] sm:$0xff]  ;;  %v191_v14 = vld [vmem:[%s1319_s1 + $0xc0] sm:$0xff]  ;;  %v177_v17 = vld [vmem:[%s1319_s1 + $0x50] sm:$0xff] }
  0x7d   :  { %v67_v20 = vsel %vm65_vm1, %v911_v16, %v912_v15  ;;  %v176_v15 = vld [vmem:[%s1319_s1 + $0x48] sm:$0xff] }
  0x7e   :  { %v60_v21 = vpop.permute.xlu1 %59  ;;  %v41_v22 = vpop.permute.xlu0 %40  ;;  %866 = vmatpush1.bf16.msra.mxu0 %v865_v18  ;;  %884 = vmatpush1.bf16.msra.mxu1 %v865_v18  ;;  %v867_v23 = vpack.c.bf16 %v67_v20, %v48_v19  ;;  %v193_v18 = vld [vmem:[%s1319_s1 + $0xd0] sm:$0xff]  ;;  %v178_v19 = vld [vmem:[%s1319_s1 + $0x58] sm:$0xff] }
  0x7f   :  { %v66_v24 = vsel %vm65_vm1, %v60_v21, %v911_v16  ;;  %v47_v25 = vsel %vm46_vm2, %v41_v22, %v906_v10  ;;  %v189_v10 = vld [vmem:[%s1319_s1 + $0xb0] sm:$0xff]  ;;  %v192_v16 = vld [vmem:[%s1319_s1 + $0xc8] sm:$0xff]  ;;  %v194_v20 = vld [vmem:[%s1319_s1 + $0xd8] sm:$0xff] }
  0x80   :  { %v869_v26 = vpack.c.bf16 %v66_v24, %v47_v25  ;;  %868 = vmatprep.subr.bf16.mxu0 %v867_v23  ;;  %880 = vmatprep.subr.bf16.mxu1 %v867_v23  ;;  %v179_v21 = vld [vmem:[%s1319_s1 + $0x60] sm:$0xff]  ;;  %v180_v23 = vld [vmem:[%s1319_s1 + $0x68] sm:$0xff]  ;;  %v181_v25 = vld [vmem:[%s1319_s1 + $0x70] sm:$0xff] }
  0x81   :  { %v195_v22 = vld [vmem:[%s1319_s1 + $0xe0] sm:$0xff]  ;;  %v196_v24 = vld [vmem:[%s1319_s1 + $0xe8] sm:$0xff] }
  0x82   :  { %v920_v27 = vpop.permute.xlu1 %919  ;;  %v915_v28 = vpop.permute.xlu0 %914  ;;  %870 = vmatpush1.bf16.msra.mxu0 %v869_v26  ;;  %885 = vmatpush1.bf16.msra.mxu1 %v869_v26  ;;  %v197_v26 = vld [vmem:[%s1319_s1 + $0xf0] sm:$0xff] }
  0x83   :  { %v922_v29 = vunpack.i.h.bf16 %v920_v27  ;;  %v921_v30 = vunpack.i.l.bf16 %v920_v27  ;;  %v917_v31 = vunpack.i.h.bf16 %v915_v28  ;;  %v916_v32 = vunpack.i.l.bf16 %v915_v28  ;;  %v182_v27 = vld [vmem:[%s1319_s1 + $0x78] sm:$0xff] }
  0x84   :  { %v198_v28 = vld [vmem:[%s1319_s1 + $0xf8] sm:$0xff] }
  0x85   :  { %v86_v33 = vsel %vm84_vm4, %v916_v32, %v917_v31  ;;  %v105_v34 = vsel %vm103_vm3, %v921_v30, %v922_v29 }
  0x86   :  { %v98_v35 = vpop.permute.xlu1 %97  ;;  %v79_v36 = vpop.permute.xlu0 %78  ;;  %v871_v37 = vpack.c.bf16 %v105_v34, %v86_v33 }
  0x87   :  { %v104_v38 = vsel %vm103_vm3, %v98_v35, %v921_v30  ;;  %v85_v39 = vsel %vm84_vm4, %v79_v36, %v916_v32 }
  0x88   :  { %v873_v40 = vpack.c.bf16 %v104_v38, %v85_v39  ;;  %872 = vmatprep.subr.bf16.mxu0 %v871_v37  ;;  %881 = vmatprep.subr.bf16.mxu1 %v871_v37 }
  0x8a   :  { %v930_v41 = vpop.permute.xlu1 %929  ;;  %v925_v42 = vpop.permute.xlu0 %924  ;;  %874 = vmatpush1.bf16.msra.mxu0 %v873_v40  ;;  %886 = vmatpush1.bf16.msra.mxu1 %v873_v40 }
  0x8b   :  { %v932_v43 = vunpack.i.h.bf16 %v930_v41  ;;  %v931_v44 = vunpack.i.l.bf16 %v930_v41  ;;  %v927_v45 = vunpack.i.h.bf16 %v925_v42  ;;  %v926_v46 = vunpack.i.l.bf16 %v925_v42 }
  0x8d   :  { %v124_v47 = vsel %vm122_vm6, %v926_v46, %v927_v45  ;;  %v143_v48 = vsel %vm141_vm5, %v931_v44, %v932_v43 }
  0x8e   :  { %v136_v49 = vpop.permute.xlu1 %135  ;;  %v117_v50 = vpop.permute.xlu0 %116  ;;  %v875_v51 = vpack.c.bf16 %v143_v48, %v124_v47 }
  0x8f   :  { %v142_v52 = vsel %vm141_vm5, %v136_v49, %v931_v44  ;;  %v123_v53 = vsel %vm122_vm6, %v117_v50, %v926_v46 }
  0x90   :  { %v877_v54 = vpack.c.bf16 %v142_v52, %v123_v53  ;;  %876 = vmatprep.subr.bf16.mxu0 %v875_v51  ;;  %882 = vmatprep.subr.bf16.mxu1 %v875_v51 }
  0x92   :  { %v159_v55 = vpop.permute.xlu1 %158  ;;  %v157_v56 = vpop.permute.xlu0 %156  ;;  %878 = vmatpush1.bf16.msra.mxu0 %v877_v54  ;;  %887 = vmatpush1.bf16.msra.mxu1 %v877_v54 }
  0x93   :  { %v162_v57 = vsel %vm160_vm7, %v157_v56, %v159_v55 }
  0x94   :  { %330 = vmatprep.subr.mxu0 %v162_v57  ;;  %883 = vmatprep.subr.mxu1 %v162_v57 }
  0x96   :  { %v155_v58 = vpop.permute.xlu0 %154 }
  0x97   :  { %v161_v61 = vsel %vm160_vm7, %v155_v58, %v157_v56 }
  0x98   :  { %331 = vmatpush1.msra.mxu0 %v161_v61  ;;  %888 = vmatpush1.msra.mxu1 %v161_v61 }
  0x99   :  { %831 = vmatmul.mubr.msk.f32.vlgmr.msra.gmra.mrb[0].mxu0 %vm217_vm8, %v167_v59  ;;  %847 = vmatmul.mubr.msk.f32.vlgmr.msra.gmra.mrb[0].mxu1 %vm217_vm8, %v183_v60 }
  0x9a   :  { %384 = vmatprep.mubr.f32.mxu0 %v940_v4  ;;  %480 = vmatprep.mubr.f32.mxu1 %v940_v4 }
  0x9d   :  { %832 = vmatmul.mubr.msk.f32.gmra.mrb[2].mxu0 %vm217_vm8, %v168_v62  ;;  %848 = vmatmul.mubr.msk.f32.gmra.mrb[2].mxu1 %vm217_vm8, %v184_v63 }
  0x9e   :  { %390 = vmatprep.mubr.f32.mxu0 %v940_v4  ;;  %486 = vmatprep.mubr.f32.mxu1 %v940_v4 }
  0xa1   :  { %833 = vmatmul.mubr.msk.f32.gmra.mrb[4].mxu0 %vm217_vm8, %v169_v0  ;;  %849 = vmatmul.mubr.msk.f32.gmra.mrb[4].mxu1 %vm217_vm8, %v185_v1 }
  0xa2   :  { %396 = vmatprep.mubr.f32.mxu0 %v940_v4  ;;  %492 = vmatprep.mubr.f32.mxu1 %v940_v4 }
  0xa5   :  { %834 = vmatmul.mubr.msk.f32.gmra.mrb[6].mxu0 %vm217_vm8, %v170_v2  ;;  %850 = vmatmul.mubr.msk.f32.gmra.mrb[6].mxu1 %vm217_vm8, %v186_v3 }
  0xa6   :  { %402 = vmatprep.mubr.f32.mxu0 %v940_v4  ;;  %498 = vmatprep.mubr.f32.mxu1 %v940_v4 }
  0xa9   :  { %835 = vmatmul.mubr.msk.f32.gmra.mrb[8].mxu0 %vm217_vm8, %v171_v5  ;;  %851 = vmatmul.mubr.msk.f32.gmra.mrb[8].mxu1 %vm217_vm8, %v187_v6 }
  0xaa   :  { %408 = vmatprep.mubr.f32.mxu0 %v940_v4  ;;  %504 = vmatprep.mubr.f32.mxu1 %v940_v4 }
  0xad   :  { %836 = vmatmul.mubr.msk.f32.gmra.mrb[10].mxu0 %vm217_vm8, %v172_v7  ;;  %852 = vmatmul.mubr.msk.f32.gmra.mrb[10].mxu1 %vm217_vm8, %v188_v8 }
  0xae   :  { %414 = vmatprep.mubr.f32.mxu0 %v940_v4  ;;  %510 = vmatprep.mubr.f32.mxu1 %v940_v4 }
  0xb1   :  { %837 = vmatmul.mubr.msk.f32.gmra.mrb[12].mxu0 %vm217_vm8, %v173_v9  ;;  %853 = vmatmul.mubr.msk.f32.gmra.mrb[12].mxu1 %vm217_vm8, %v189_v10 }
  0xb2   :  { %420 = vmatprep.mubr.f32.mxu0 %v940_v4  ;;  %516 = vmatprep.mubr.f32.mxu1 %v940_v4 }
  0xb5   :  { %838 = vmatmul.mubr.msk.f32.gmra.mrb[14].mxu0 %vm217_vm8, %v174_v11  ;;  %854 = vmatmul.mubr.msk.f32.gmra.mrb[14].mxu1 %vm217_vm8, %v190_v12 }
  0xb6   :  { %426 = vmatprep.mubr.f32.mxu0 %v940_v4  ;;  %522 = vmatprep.mubr.f32.mxu1 %v940_v4 }
  0xb9   :  { %839 = vmatmul.mubr.msk.f32.gmra.mrb[16].mxu0 %vm217_vm8, %v175_v13  ;;  %855 = vmatmul.mubr.msk.f32.gmra.mrb[16].mxu1 %vm217_vm8, %v191_v14 }
  0xba   :  { %432 = vmatprep.mubr.f32.mxu0 %v940_v4  ;;  %528 = vmatprep.mubr.f32.mxu1 %v940_v4 }
  0xbd   :  { %840 = vmatmul.mubr.msk.f32.gmra.mrb[18].mxu0 %vm217_vm8, %v176_v15  ;;  %856 = vmatmul.mubr.msk.f32.gmra.mrb[18].mxu1 %vm217_vm8, %v192_v16 }
  0xbe   :  { %438 = vmatprep.mubr.f32.mxu0 %v940_v4  ;;  %534 = vmatprep.mubr.f32.mxu1 %v940_v4 }
  0xc1   :  { %841 = vmatmul.mubr.msk.f32.gmra.mrb[20].mxu0 %vm217_vm8, %v177_v17  ;;  %857 = vmatmul.mubr.msk.f32.gmra.mrb[20].mxu1 %vm217_vm8, %v193_v18 }
  0xc2   :  { %444 = vmatprep.mubr.f32.mxu0 %v940_v4  ;;  %540 = vmatprep.mubr.f32.mxu1 %v940_v4 }
  0xc5   :  { %842 = vmatmul.mubr.msk.f32.gmra.mrb[22].mxu0 %vm217_vm8, %v178_v19  ;;  %858 = vmatmul.mubr.msk.f32.gmra.mrb[22].mxu1 %vm217_vm8, %v194_v20 }
  0xc6   :  { %450 = vmatprep.mubr.f32.mxu0 %v940_v4  ;;  %546 = vmatprep.mubr.f32.mxu1 %v940_v4 }
  0xc9   :  { %843 = vmatmul.mubr.msk.f32.gmra.mrb[24].mxu0 %vm217_vm8, %v179_v21  ;;  %859 = vmatmul.mubr.msk.f32.gmra.mrb[24].mxu1 %vm217_vm8, %v195_v22 }
  0xca   :  { %456 = vmatprep.mubr.f32.mxu0 %v940_v4  ;;  %552 = vmatprep.mubr.f32.mxu1 %v940_v4 }
  0xcd   :  { %844 = vmatmul.mubr.msk.f32.gmra.mrb[26].mxu0 %vm217_vm8, %v180_v23  ;;  %860 = vmatmul.mubr.msk.f32.gmra.mrb[26].mxu1 %vm217_vm8, %v196_v24 }
  0xce   :  { %462 = vmatprep.mubr.f32.mxu0 %v940_v4  ;;  %558 = vmatprep.mubr.f32.mxu1 %v940_v4 }
  0xd1   :  { %845 = vmatmul.mubr.msk.f32.gmra.mrb[28].mxu0 %vm217_vm8, %v181_v25  ;;  %861 = vmatmul.mubr.msk.f32.gmra.mrb[28].mxu1 %vm217_vm8, %v197_v26 }
  0xd2   :  { %468 = vmatprep.mubr.f32.mxu0 %v940_v4  ;;  %564 = vmatprep.mubr.f32.mxu1 %v940_v4 }
  0xd5   :  { %846 = vmatmul.mubr.msk.f32.gmra.mrb[30].mxu0 %vm217_vm8, %v182_v27  ;;  %862 = vmatmul.mubr.msk.f32.gmra.mrb[30].mxu1 %vm217_vm8, %v198_v28 }
 0x16c   :  { %v380_v29 = vpop.f32.mrb[0].mxu0  ;;  %v476_v30 = vpop.f32.mrb[0].mxu1 }
 0x16d   :  { %vm571_vm9 = vcmp.gt.f32.partialorder %v380_v29, 0.0  ;;  %v635_v31 = vmul.f32 -3.83, %v380_v29  ;;  %vm603_vm10 = vcmp.gt.f32.partialorder %v476_v30, 0.0  ;;  %v667_v32 = vmul.f32 -3.83, %v476_v30 }
 0x16e   :  { %v382_v33 = vpop.f32.mrb[1].mxu0  ;;  %v478_v4 = vpop.f32.mrb[1].mxu1 }
 0x16f   :  { %v699_v34 = vsel %vm571_vm9, %v380_v29, %v635_v31  ;;  %v731_v35 = vsel %vm603_vm10, %v476_v30, %v667_v32  ;;  %vm572_vm11 = vcmp.gt.f32.partialorder %v382_v33, 0.0  ;;  %v636_v36 = vmul.f32 -3.83, %v382_v33 }
 0x170   :  { %763 = vst [vmem:[%s1320_s2] sm:$0xff] %v699_v34  ;;  %795 = vst [vmem:[%s1320_s2 + $0x100] sm:$0xff] %v731_v35  ;;  %vm604_vm12 = vcmp.gt.f32.partialorder %v478_v4, 0.0  ;;  %v668_v37 = vmul.f32 -3.83, %v478_v4  ;;  %v386_v38 = vpop.f32.mrb[2].mxu0  ;;  %v482_v39 = vpop.f32.mrb[2].mxu1 }
 0x171   :  { %v700_v40 = vsel %vm572_vm11, %v382_v33, %v636_v36  ;;  %vm573_vm13 = vcmp.gt.f32.partialorder %v386_v38, 0.0  ;;  %v637_v41 = vmul.f32 -3.83, %v386_v38  ;;  %vm605_vm14 = vcmp.gt.f32.partialorder %v482_v39, 0.0  ;;  %v388_v42 = vpop.f32.mrb[3].mxu0  ;;  %v484_v43 = vpop.f32.mrb[3].mxu1 }
 0x172   :  { %764 = vst [vmem:[%s1320_s2 + $0x8] sm:$0xff] %v700_v40  ;;  %v732_v44 = vsel %vm604_vm12, %v478_v4, %v668_v37  ;;  %v669_v45 = vmul.f32 -3.83, %v482_v39  ;;  %vm574_vm15 = vcmp.gt.f32.partialorder %v388_v42, 0.0  ;;  %v638_v46 = vmul.f32 -3.83, %v388_v42 }
 0x173   :  { %796 = vst [vmem:[%s1320_s2 + $0x108] sm:$0xff] %v732_v44  ;;  %v701_v47 = vsel %vm573_vm13, %v386_v38, %v637_v41  ;;  %vm606_vm0 = vcmp.gt.f32.partialorder %v484_v43, 0.0  ;;  %v670_v48 = vmul.f32 -3.83, %v484_v43 }
 0x174   :  { %765 = vst [vmem:[%s1320_s2 + $0x10] sm:$0xff] %v701_v47  ;;  %v733_v49 = vsel %vm605_vm14, %v482_v39, %v669_v45  ;;  %v702_v50 = vsel %vm574_vm15, %v388_v42, %v638_v46  ;;  %v392_v51 = vpop.f32.mrb[4].mxu0  ;;  %v488_v52 = vpop.f32.mrb[4].mxu1 }
 0x175   :  { %797 = vst [vmem:[%s1320_s2 + $0x110] sm:$0xff] %v733_v49  ;;  %766 = vst [vmem:[%s1320_s2 + $0x18] sm:$0xff] %v702_v50  ;;  %v734_v53 = vsel %vm606_vm0, %v484_v43, %v670_v48  ;;  %vm575_vm1 = vcmp.gt.f32.partialorder %v392_v51, 0.0  ;;  %v639_v54 = vmul.f32 -3.83, %v392_v51  ;;  %vm607_vm2 = vcmp.gt.f32.partialorder %v488_v52, 0.0 }
 0x176   :  { %v394_v55 = vpop.f32.mrb[5].mxu0  ;;  %v490_v56 = vpop.f32.mrb[5].mxu1  ;;  %798 = vst [vmem:[%s1320_s2 + $0x118] sm:$0xff] %v734_v53  ;;  %v671_v57 = vmul.f32 -3.83, %v488_v52 }
 0x177   :  { %vm576_vm3 = vcmp.gt.f32.partialorder %v394_v55, 0.0  ;;  %v640_v58 = vmul.f32 -3.83, %v394_v55  ;;  %vm608_vm4 = vcmp.gt.f32.partialorder %v490_v56, 0.0  ;;  %v703_v59 = vsel %vm575_vm1, %v392_v51, %v639_v54 }
 0x178   :  { %v672_v60 = vmul.f32 -3.83, %v490_v56  ;;  %767 = vst [vmem:[%s1320_s2 + $0x20] sm:$0xff] %v703_v59  ;;  %v735_v61 = vsel %vm607_vm2, %v488_v52, %v671_v57  ;;  %v398_v63 = vpop.f32.mrb[6].mxu0  ;;  %v494_v0 = vpop.f32.mrb[6].mxu1 }
 0x179   :  { %v704_v62 = vsel %vm576_vm3, %v394_v55, %v640_v58  ;;  %799 = vst [vmem:[%s1320_s2 + $0x120] sm:$0xff] %v735_v61  ;;  %vm577_vm5 = vcmp.gt.f32.partialorder %v398_v63, 0.0  ;;  %v641_v2 = vmul.f32 -3.83, %v398_v63  ;;  %vm609_vm6 = vcmp.gt.f32.partialorder %v494_v0, 0.0  ;;  %v400_v3 = vpop.f32.mrb[7].mxu0 }
 0x17a   :  { %768 = vst [vmem:[%s1320_s2 + $0x28] sm:$0xff] %v704_v62  ;;  %v736_v1 = vsel %vm608_vm4, %v490_v56, %v672_v60  ;;  %v496_v5 = vpop.f32.mrb[7].mxu1  ;;  %v673_v6 = vmul.f32 -3.83, %v494_v0  ;;  %vm578_vm7 = vcmp.gt.f32.partialorder %v400_v3, 0.0 }
 0x17b   :  { %800 = vst [vmem:[%s1320_s2 + $0x128] sm:$0xff] %v736_v1  ;;  %v642_v7 = vmul.f32 -3.83, %v400_v3  ;;  %vm610_vm8 = vcmp.gt.f32.partialorder %v496_v5, 0.0  ;;  %v705_v8 = vsel %vm577_vm5, %v398_v63, %v641_v2  ;;  %v674_v9 = vmul.f32 -3.83, %v496_v5 }
 0x17c   :  { %769 = vst [vmem:[%s1320_s2 + $0x30] sm:$0xff] %v705_v8  ;;  %v737_v10 = vsel %vm609_vm6, %v494_v0, %v673_v6  ;;  %v404_v12 = vpop.f32.mrb[8].mxu0  ;;  %v500_v13 = vpop.f32.mrb[8].mxu1 }
 0x17d   :  { %v706_v11 = vsel %vm578_vm7, %v400_v3, %v642_v7  ;;  %801 = vst [vmem:[%s1320_s2 + $0x130] sm:$0xff] %v737_v10  ;;  %v738_v14 = vsel %vm610_vm8, %v496_v5, %v674_v9  ;;  %vm579_vm9 = vcmp.gt.f32.partialorder %v404_v12, 0.0  ;;  %v643_v15 = vmul.f32 -3.83, %v404_v12  ;;  %v406_v16 = vpop.f32.mrb[9].mxu0  ;;  %v502_v17 = vpop.f32.mrb[9].mxu1 }
 0x17e   :  { %770 = vst [vmem:[%s1320_s2 + $0x38] sm:$0xff] %v706_v11  ;;  %vm611_vm10 = vcmp.gt.f32.partialorder %v500_v13, 0.0  ;;  %802 = vst [vmem:[%s1320_s2 + $0x138] sm:$0xff] %v738_v14  ;;  %v675_v18 = vmul.f32 -3.83, %v500_v13  ;;  %vm580_vm11 = vcmp.gt.f32.partialorder %v406_v16, 0.0 }
 0x17f   :  { %v644_v19 = vmul.f32 -3.83, %v406_v16  ;;  %vm612_vm12 = vcmp.gt.f32.partialorder %v502_v17, 0.0  ;;  %v707_v20 = vsel %vm579_vm9, %v404_v12, %v643_v15  ;;  %v676_v21 = vmul.f32 -3.83, %v502_v17 }
 0x180   :  { %771 = vst [vmem:[%s1320_s2 + $0x40] sm:$0xff] %v707_v20  ;;  %v739_v22 = vsel %vm611_vm10, %v500_v13, %v675_v18  ;;  %v410_v24 = vpop.f32.mrb[10].mxu0  ;;  %v506_v25 = vpop.f32.mrb[10].mxu1 }
 0x181   :  { %v708_v23 = vsel %vm580_vm11, %v406_v16, %v644_v19  ;;  %803 = vst [vmem:[%s1320_s2 + $0x140] sm:$0xff] %v739_v22  ;;  %v740_v26 = vsel %vm612_vm12, %v502_v17, %v676_v21  ;;  %vm581_vm13 = vcmp.gt.f32.partialorder %v410_v24, 0.0  ;;  %v645_v27 = vmul.f32 -3.83, %v410_v24  ;;  %v412_v28 = vpop.f32.mrb[11].mxu0  ;;  %v508_v29 = vpop.f32.mrb[11].mxu1 }
 0x182   :  { %772 = vst [vmem:[%s1320_s2 + $0x48] sm:$0xff] %v708_v23  ;;  %vm613_vm14 = vcmp.gt.f32.partialorder %v506_v25, 0.0  ;;  %804 = vst [vmem:[%s1320_s2 + $0x148] sm:$0xff] %v740_v26  ;;  %v677_v30 = vmul.f32 -3.83, %v506_v25  ;;  %vm582_vm15 = vcmp.gt.f32.partialorder %v412_v28, 0.0 }
 0x183   :  { %v646_v31 = vmul.f32 -3.83, %v412_v28  ;;  %vm614_vm0 = vcmp.gt.f32.partialorder %v508_v29, 0.0  ;;  %v709_v32 = vsel %vm581_vm13, %v410_v24, %v645_v27  ;;  %v678_v33 = vmul.f32 -3.83, %v508_v29 }
 0x184   :  { %773 = vst [vmem:[%s1320_s2 + $0x50] sm:$0xff] %v709_v32  ;;  %v741_v4 = vsel %vm613_vm14, %v506_v25, %v677_v30  ;;  %v416_v35 = vpop.f32.mrb[12].mxu0  ;;  %v512_v36 = vpop.f32.mrb[12].mxu1 }
 0x185   :  { %v710_v34 = vsel %vm582_vm15, %v412_v28, %v646_v31  ;;  %805 = vst [vmem:[%s1320_s2 + $0x150] sm:$0xff] %v741_v4  ;;  %v742_v37 = vsel %vm614_vm0, %v508_v29, %v678_v33  ;;  %vm583_vm1 = vcmp.gt.f32.partialorder %v416_v35, 0.0  ;;  %v647_v38 = vmul.f32 -3.83, %v416_v35  ;;  %v418_v39 = vpop.f32.mrb[13].mxu0  ;;  %v514_v40 = vpop.f32.mrb[13].mxu1 }
 0x186   :  { %774 = vst [vmem:[%s1320_s2 + $0x58] sm:$0xff] %v710_v34  ;;  %vm615_vm2 = vcmp.gt.f32.partialorder %v512_v36, 0.0  ;;  %806 = vst [vmem:[%s1320_s2 + $0x158] sm:$0xff] %v742_v37  ;;  %v679_v41 = vmul.f32 -3.83, %v512_v36  ;;  %vm584_vm3 = vcmp.gt.f32.partialorder %v418_v39, 0.0 }
 0x187   :  { %v648_v42 = vmul.f32 -3.83, %v418_v39  ;;  %vm616_vm4 = vcmp.gt.f32.partialorder %v514_v40, 0.0  ;;  %v711_v43 = vsel %vm583_vm1, %v416_v35, %v647_v38  ;;  %v680_v44 = vmul.f32 -3.83, %v514_v40 }
 0x188   :  { %775 = vst [vmem:[%s1320_s2 + $0x60] sm:$0xff] %v711_v43  ;;  %v743_v45 = vsel %vm615_vm2, %v512_v36, %v679_v41  ;;  %v422_v47 = vpop.f32.mrb[14].mxu0  ;;  %v518_v48 = vpop.f32.mrb[14].mxu1 }
 0x189   :  { %v712_v46 = vsel %vm584_vm3, %v418_v39, %v648_v42  ;;  %807 = vst [vmem:[%s1320_s2 + $0x160] sm:$0xff] %v743_v45  ;;  %v744_v49 = vsel %vm616_vm4, %v514_v40, %v680_v44  ;;  %vm585_vm5 = vcmp.gt.f32.partialorder %v422_v47, 0.0  ;;  %v649_v50 = vmul.f32 -3.83, %v422_v47  ;;  %v424_v51 = vpop.f32.mrb[15].mxu0  ;;  %v520_v52 = vpop.f32.mrb[15].mxu1 }
 0x18a   :  { %776 = vst [vmem:[%s1320_s2 + $0x68] sm:$0xff] %v712_v46  ;;  %vm617_vm6 = vcmp.gt.f32.partialorder %v518_v48, 0.0  ;;  %808 = vst [vmem:[%s1320_s2 + $0x168] sm:$0xff] %v744_v49  ;;  %v681_v53 = vmul.f32 -3.83, %v518_v48  ;;  %vm586_vm7 = vcmp.gt.f32.partialorder %v424_v51, 0.0 }
 0x18b   :  { %v650_v54 = vmul.f32 -3.83, %v424_v51  ;;  %vm618_vm8 = vcmp.gt.f32.partialorder %v520_v52, 0.0  ;;  %v713_v55 = vsel %vm585_vm5, %v422_v47, %v649_v50  ;;  %v682_v56 = vmul.f32 -3.83, %v520_v52 }
 0x18c   :  { %777 = vst [vmem:[%s1320_s2 + $0x70] sm:$0xff] %v713_v55  ;;  %v745_v57 = vsel %vm617_vm6, %v518_v48, %v681_v53  ;;  %v428_v59 = vpop.f32.mrb[16].mxu0  ;;  %v524_v60 = vpop.f32.mrb[16].mxu1 }
 0x18d   :  { %v714_v58 = vsel %vm586_vm7, %v424_v51, %v650_v54  ;;  %809 = vst [vmem:[%s1320_s2 + $0x170] sm:$0xff] %v745_v57  ;;  %v746_v61 = vsel %vm618_vm8, %v520_v52, %v682_v56  ;;  %vm587_vm9 = vcmp.gt.f32.partialorder %v428_v59, 0.0  ;;  %v651_v62 = vmul.f32 -3.83, %v428_v59  ;;  %v430_v63 = vpop.f32.mrb[17].mxu0  ;;  %v526_v0 = vpop.f32.mrb[17].mxu1 }
 0x18e   :  { %778 = vst [vmem:[%s1320_s2 + $0x78] sm:$0xff] %v714_v58  ;;  %vm619_vm10 = vcmp.gt.f32.partialorder %v524_v60, 0.0  ;;  %810 = vst [vmem:[%s1320_s2 + $0x178] sm:$0xff] %v746_v61  ;;  %v683_v1 = vmul.f32 -3.83, %v524_v60  ;;  %vm588_vm11 = vcmp.gt.f32.partialorder %v430_v63, 0.0 }
 0x18f   :  { %v652_v2 = vmul.f32 -3.83, %v430_v63  ;;  %vm620_vm12 = vcmp.gt.f32.partialorder %v526_v0, 0.0  ;;  %v715_v3 = vsel %vm587_vm9, %v428_v59, %v651_v62  ;;  %v684_v5 = vmul.f32 -3.83, %v526_v0 }
 0x190   :  { %779 = vst [vmem:[%s1320_s2 + $0x80] sm:$0xff] %v715_v3  ;;  %v747_v6 = vsel %vm619_vm10, %v524_v60, %v683_v1  ;;  %v434_v8 = vpop.f32.mrb[18].mxu0  ;;  %v530_v9 = vpop.f32.mrb[18].mxu1 }
 0x191   :  { %v716_v7 = vsel %vm588_vm11, %v430_v63, %v652_v2  ;;  %811 = vst [vmem:[%s1320_s2 + $0x180] sm:$0xff] %v747_v6  ;;  %v748_v10 = vsel %vm620_vm12, %v526_v0, %v684_v5  ;;  %vm589_vm13 = vcmp.gt.f32.partialorder %v434_v8, 0.0  ;;  %v653_v11 = vmul.f32 -3.83, %v434_v8  ;;  %v436_v12 = vpop.f32.mrb[19].mxu0  ;;  %v532_v13 = vpop.f32.mrb[19].mxu1 }
 0x192   :  { %780 = vst [vmem:[%s1320_s2 + $0x88] sm:$0xff] %v716_v7  ;;  %vm621_vm14 = vcmp.gt.f32.partialorder %v530_v9, 0.0  ;;  %812 = vst [vmem:[%s1320_s2 + $0x188] sm:$0xff] %v748_v10  ;;  %v685_v14 = vmul.f32 -3.83, %v530_v9  ;;  %vm590_vm15 = vcmp.gt.f32.partialorder %v436_v12, 0.0 }
 0x193   :  { %v654_v15 = vmul.f32 -3.83, %v436_v12  ;;  %vm622_vm0 = vcmp.gt.f32.partialorder %v532_v13, 0.0  ;;  %v717_v16 = vsel %vm589_vm13, %v434_v8, %v653_v11  ;;  %v686_v17 = vmul.f32 -3.83, %v532_v13 }
 0x194   :  { %781 = vst [vmem:[%s1320_s2 + $0x90] sm:$0xff] %v717_v16  ;;  %v749_v18 = vsel %vm621_vm14, %v530_v9, %v685_v14  ;;  %v440_v20 = vpop.f32.mrb[20].mxu0  ;;  %v536_v21 = vpop.f32.mrb[20].mxu1 }
 0x195   :  { %v718_v19 = vsel %vm590_vm15, %v436_v12, %v654_v15  ;;  %813 = vst [vmem:[%s1320_s2 + $0x190] sm:$0xff] %v749_v18  ;;  %v750_v22 = vsel %vm622_vm0, %v532_v13, %v686_v17  ;;  %vm591_vm1 = vcmp.gt.f32.partialorder %v440_v20, 0.0  ;;  %v655_v23 = vmul.f32 -3.83, %v440_v20  ;;  %v442_v24 = vpop.f32.mrb[21].mxu0  ;;  %v538_v25 = vpop.f32.mrb[21].mxu1 }
 0x196   :  { %782 = vst [vmem:[%s1320_s2 + $0x98] sm:$0xff] %v718_v19  ;;  %vm623_vm2 = vcmp.gt.f32.partialorder %v536_v21, 0.0  ;;  %814 = vst [vmem:[%s1320_s2 + $0x198] sm:$0xff] %v750_v22  ;;  %v687_v26 = vmul.f32 -3.83, %v536_v21  ;;  %vm592_vm3 = vcmp.gt.f32.partialorder %v442_v24, 0.0 }
 0x197   :  { %v656_v27 = vmul.f32 -3.83, %v442_v24  ;;  %vm624_vm4 = vcmp.gt.f32.partialorder %v538_v25, 0.0  ;;  %v719_v28 = vsel %vm591_vm1, %v440_v20, %v655_v23  ;;  %v688_v29 = vmul.f32 -3.83, %v538_v25 }
 0x198   :  { %783 = vst [vmem:[%s1320_s2 + $0xa0] sm:$0xff] %v719_v28  ;;  %v751_v30 = vsel %vm623_vm2, %v536_v21, %v687_v26  ;;  %v446_v32 = vpop.f32.mrb[22].mxu0  ;;  %v542_v33 = vpop.f32.mrb[22].mxu1 }
 0x199   :  { %v720_v31 = vsel %vm592_vm3, %v442_v24, %v656_v27  ;;  %815 = vst [vmem:[%s1320_s2 + $0x1a0] sm:$0xff] %v751_v30  ;;  %v752_v4 = vsel %vm624_vm4, %v538_v25, %v688_v29  ;;  %vm593_vm5 = vcmp.gt.f32.partialorder %v446_v32, 0.0  ;;  %v657_v34 = vmul.f32 -3.83, %v446_v32  ;;  %v448_v35 = vpop.f32.mrb[23].mxu0  ;;  %v544_v36 = vpop.f32.mrb[23].mxu1 }
 0x19a   :  { %784 = vst [vmem:[%s1320_s2 + $0xa8] sm:$0xff] %v720_v31  ;;  %vm625_vm6 = vcmp.gt.f32.partialorder %v542_v33, 0.0  ;;  %816 = vst [vmem:[%s1320_s2 + $0x1a8] sm:$0xff] %v752_v4  ;;  %v689_v37 = vmul.f32 -3.83, %v542_v33  ;;  %vm594_vm7 = vcmp.gt.f32.partialorder %v448_v35, 0.0 }
 0x19b   :  { %v658_v38 = vmul.f32 -3.83, %v448_v35  ;;  %vm626_vm8 = vcmp.gt.f32.partialorder %v544_v36, 0.0  ;;  %v721_v39 = vsel %vm593_vm5, %v446_v32, %v657_v34  ;;  %v690_v40 = vmul.f32 -3.83, %v544_v36 }
 0x19c   :  { %785 = vst [vmem:[%s1320_s2 + $0xb0] sm:$0xff] %v721_v39  ;;  %v753_v41 = vsel %vm625_vm6, %v542_v33, %v689_v37  ;;  %v452_v43 = vpop.f32.mrb[24].mxu0  ;;  %v548_v44 = vpop.f32.mrb[24].mxu1 }
 0x19d   :  { %v722_v42 = vsel %vm594_vm7, %v448_v35, %v658_v38  ;;  %817 = vst [vmem:[%s1320_s2 + $0x1b0] sm:$0xff] %v753_v41  ;;  %v754_v45 = vsel %vm626_vm8, %v544_v36, %v690_v40  ;;  %vm595_vm9 = vcmp.gt.f32.partialorder %v452_v43, 0.0  ;;  %v659_v46 = vmul.f32 -3.83, %v452_v43  ;;  %v454_v47 = vpop.f32.mrb[25].mxu0  ;;  %v550_v48 = vpop.f32.mrb[25].mxu1 }
 0x19e   :  { %786 = vst [vmem:[%s1320_s2 + $0xb8] sm:$0xff] %v722_v42  ;;  %vm627_vm10 = vcmp.gt.f32.partialorder %v548_v44, 0.0  ;;  %818 = vst [vmem:[%s1320_s2 + $0x1b8] sm:$0xff] %v754_v45  ;;  %v691_v49 = vmul.f32 -3.83, %v548_v44  ;;  %vm596_vm11 = vcmp.gt.f32.partialorder %v454_v47, 0.0 }
 0x19f   :  { %v660_v50 = vmul.f32 -3.83, %v454_v47  ;;  %vm628_vm12 = vcmp.gt.f32.partialorder %v550_v48, 0.0  ;;  %v723_v51 = vsel %vm595_vm9, %v452_v43, %v659_v46  ;;  %v692_v52 = vmul.f32 -3.83, %v550_v48 }
 0x1a0   :  { %787 = vst [vmem:[%s1320_s2 + $0xc0] sm:$0xff] %v723_v51  ;;  %v755_v53 = vsel %vm627_vm10, %v548_v44, %v691_v49  ;;  %v458_v55 = vpop.f32.mrb[26].mxu0  ;;  %v554_v56 = vpop.f32.mrb[26].mxu1 }
 0x1a1   :  { %v724_v54 = vsel %vm596_vm11, %v454_v47, %v660_v50  ;;  %819 = vst [vmem:[%s1320_s2 + $0x1c0] sm:$0xff] %v755_v53  ;;  %v756_v57 = vsel %vm628_vm12, %v550_v48, %v692_v52  ;;  %vm597_vm13 = vcmp.gt.f32.partialorder %v458_v55, 0.0  ;;  %v661_v58 = vmul.f32 -3.83, %v458_v55  ;;  %v460_v59 = vpop.f32.mrb[27].mxu0  ;;  %v556_v60 = vpop.f32.mrb[27].mxu1 }
 0x1a2   :  { %788 = vst [vmem:[%s1320_s2 + $0xc8] sm:$0xff] %v724_v54  ;;  %vm629_vm14 = vcmp.gt.f32.partialorder %v554_v56, 0.0  ;;  %820 = vst [vmem:[%s1320_s2 + $0x1c8] sm:$0xff] %v756_v57  ;;  %v693_v61 = vmul.f32 -3.83, %v554_v56  ;;  %vm598_vm15 = vcmp.gt.f32.partialorder %v460_v59, 0.0 }
 0x1a3   :  { %v662_v62 = vmul.f32 -3.83, %v460_v59  ;;  %vm630_vm0 = vcmp.gt.f32.partialorder %v556_v60, 0.0  ;;  %v725_v63 = vsel %vm597_vm13, %v458_v55, %v661_v58  ;;  %v694_v0 = vmul.f32 -3.83, %v556_v60 }
 0x1a4   :  { %789 = vst [vmem:[%s1320_s2 + $0xd0] sm:$0xff] %v725_v63  ;;  %v757_v1 = vsel %vm629_vm14, %v554_v56, %v693_v61  ;;  %v464_v3 = vpop.f32.mrb[28].mxu0  ;;  %v560_v5 = vpop.f32.mrb[28].mxu1 }
 0x1a5   :  { %v726_v2 = vsel %vm598_vm15, %v460_v59, %v662_v62  ;;  %821 = vst [vmem:[%s1320_s2 + $0x1d0] sm:$0xff] %v757_v1  ;;  %v758_v6 = vsel %vm630_vm0, %v556_v60, %v694_v0  ;;  %vm599_vm1 = vcmp.gt.f32.partialorder %v464_v3, 0.0  ;;  %v663_v7 = vmul.f32 -3.83, %v464_v3  ;;  %v466_v8 = vpop.f32.mrb[29].mxu0  ;;  %v562_v9 = vpop.f32.mrb[29].mxu1 }
 0x1a6   :  { %790 = vst [vmem:[%s1320_s2 + $0xd8] sm:$0xff] %v726_v2  ;;  %vm631_vm2 = vcmp.gt.f32.partialorder %v560_v5, 0.0  ;;  %822 = vst [vmem:[%s1320_s2 + $0x1d8] sm:$0xff] %v758_v6  ;;  %v695_v10 = vmul.f32 -3.83, %v560_v5  ;;  %vm600_vm3 = vcmp.gt.f32.partialorder %v466_v8, 0.0 }
 0x1a7   :  { %v664_v11 = vmul.f32 -3.83, %v466_v8  ;;  %vm632_vm4 = vcmp.gt.f32.partialorder %v562_v9, 0.0  ;;  %v727_v12 = vsel %vm599_vm1, %v464_v3, %v663_v7  ;;  %v696_v13 = vmul.f32 -3.83, %v562_v9 }
 0x1a8   :  { %791 = vst [vmem:[%s1320_s2 + $0xe0] sm:$0xff] %v727_v12  ;;  %v759_v14 = vsel %vm631_vm2, %v560_v5, %v695_v10  ;;  %v470_v16 = vpop.f32.mrb[30].mxu0  ;;  %v566_v17 = vpop.f32.mrb[30].mxu1 }
 0x1a9   :  { %v728_v15 = vsel %vm600_vm3, %v466_v8, %v664_v11  ;;  %823 = vst [vmem:[%s1320_s2 + $0x1e0] sm:$0xff] %v759_v14  ;;  %v760_v18 = vsel %vm632_vm4, %v562_v9, %v696_v13  ;;  %vm601_vm5 = vcmp.gt.f32.partialorder %v470_v16, 0.0  ;;  %v665_v19 = vmul.f32 -3.83, %v470_v16  ;;  %v472_v20 = vpop.f32.mrb[31].mxu0  ;;  %v568_v21 = vpop.f32.mrb[31].mxu1 }
 0x1aa   :  { %792 = vst [vmem:[%s1320_s2 + $0xe8] sm:$0xff] %v728_v15  ;;  %vm633_vm6 = vcmp.gt.f32.partialorder %v566_v17, 0.0  ;;  %824 = vst [vmem:[%s1320_s2 + $0x1e8] sm:$0xff] %v760_v18  ;;  %v697_v22 = vmul.f32 -3.83, %v566_v17  ;;  %vm602_vm7 = vcmp.gt.f32.partialorder %v472_v20, 0.0 }
 0x1ab   :  { %v666_v23 = vmul.f32 -3.83, %v472_v20  ;;  %vm634_vm8 = vcmp.gt.f32.partialorder %v568_v21, 0.0  ;;  %v729_v24 = vsel %vm601_vm5, %v470_v16, %v665_v19  ;;  %v698_v25 = vmul.f32 -3.83, %v568_v21 }
 0x1ac   :  { %793 = vst [vmem:[%s1320_s2 + $0xf0] sm:$0xff] %v729_v24  ;;  %v761_v26 = vsel %vm633_vm6, %v566_v17, %v697_v22 }
 0x1ad   :  { %v730_v27 = vsel %vm602_vm7, %v472_v20, %v666_v23  ;;  %825 = vst [vmem:[%s1320_s2 + $0x1f0] sm:$0xff] %v761_v26  ;;  %v762_v28 = vsel %vm634_vm8, %v568_v21, %v698_v25 }
 0x1ae   :  { %794 = vst [vmem:[%s1320_s2 + $0xf8] sm:$0xff] %v730_v27  ;;  %826 = vst [vmem:[%s1320_s2 + $0x1f8] sm:$0xff] %v762_v28 }

</bundles_post_ra>
